<compile_context>
chip_gen: v5e
topology: v5e:2x2
jax: 0.10.0
libtpu: 0.0.40
codegen_flags: <defaults>
</compile_context>

<pallas_src>
import functools

import jax
import jax.numpy as jnp
from jax.experimental import pallas as pl
from jax.experimental.pallas import tpu as pltpu

PAD = 128  # lane-dense feature width


def _make_kernel(num_layers: int, activation: str, output_size: int):
    """Build a Pallas kernel closure for a fixed number of hidden layers."""

    if activation == "relu":
        act = lambda v: jnp.maximum(v, 0.0)
    elif activation == "tanh":
        act = jnp.tanh
    else:
        raise ValueError(f"unsupported activation: {activation}")

    def kernel(x_ref, w_ref, b_ref, out_ref):
        # x_ref:   (B, PAD)            zero-padded input
        # w_ref:   (L+1, PAD, PAD)     layer weights; last slice = fused heads
        # b_ref:   (L+1, 1, PAD)       layer biases;  last slice = fused heads
        # out_ref: (B, PAD)            [softmax(actor) | critic | zeros]
        h = x_ref[...]
        for i in range(num_layers):
            h = jnp.dot(h, w_ref[i], preferred_element_type=jnp.float32)
            h = act(h + b_ref[i])  # padded lanes: 0 + 0 -> act(0) == 0
            # TODO(synk): dropout (self.do_i) omitted — dropout_rate=0 config
            #             (inference semantics); could use pltpu.prng_* if needed.

        # Fused actor+critic head: one MXU pass.
        z = jnp.dot(h, w_ref[num_layers], preferred_element_type=jnp.float32)
        z = z + b_ref[num_layers]

        # Numerically stable softmax over the actor columns only.
        lane = jax.lax.broadcasted_iota(jnp.int32, z.shape, 1)
        is_actor = lane < output_size
        logits = jnp.where(is_actor, z, jnp.float32(-1e30))
        m = jnp.max(logits, axis=-1, keepdims=True)
        e = jnp.exp(logits - m)
        denom = jnp.sum(e, axis=-1, keepdims=True)
        probs = e * pl.reciprocal(denom, approx=False)

        # Lane-dense output slab: actor probs | critic value | zero padding.
        out_ref[...] = jnp.where(is_actor, probs, z)

    return kernel


def init_params(key, input_size, output_size, hidden_size, num_layers):
    """Deterministic parameter init (Kaiming-uniform-ish, like nn.Linear)."""
    params = []
    sizes = [input_size] + [hidden_size] * num_layers
    keys = jax.random.split(key, num_layers + 2)
    for i in range(num_layers):
        fan_in, fan_out = sizes[i], sizes[i + 1]
        bound = 1.0 / jnp.sqrt(fan_in)
        kw, kb = jax.random.split(keys[i])
        w = jax.random.uniform(kw, (fan_in, fan_out), jnp.float32, -bound, bound)
        b = jax.random.uniform(kb, (1, fan_out), jnp.float32, -bound, bound)
        params += [w, b]

    bound = 1.0 / jnp.sqrt(hidden_size)
    kw, kb = jax.random.split(keys[num_layers])
    wa = jax.random.uniform(kw, (hidden_size, output_size), jnp.float32, -bound, bound)
    ba = jax.random.uniform(kb, (1, output_size), jnp.float32, -bound, bound)
    kw, kb = jax.random.split(keys[num_layers + 1])
    wc = jax.random.uniform(kw, (hidden_size, 1), jnp.float32, -bound, bound)
    bc = jax.random.uniform(kb, (1, 1), jnp.float32, -bound, bound)
    params += [wa, ba, wc, bc]
    return params


def pack_params(params, num_layers, output_size, pad=PAD):
    """Pack the per-layer weights/biases into two lane-dense slabs.

    Weight slab: (L+1, pad, pad) — slice L is the fused actor|critic head.
    Bias slab:   (L+1, 1, pad).
    """
    w_slab = jnp.zeros((num_layers + 1, pad, pad), jnp.float32)
    b_slab = jnp.zeros((num_layers + 1, 1, pad), jnp.float32)
    idx = 0
    for i in range(num_layers):
        w, b = params[idx], params[idx + 1]
        idx += 2
        assert w.shape[0] <= pad and w.shape[1] <= pad
        w_slab = w_slab.at[i, : w.shape[0], : w.shape[1]].set(w)
        b_slab = b_slab.at[i, 0, : w.shape[1]].set(b.reshape(-1))

    wa, ba, wc, bc = params[idx], params[idx + 1], params[idx + 2], params[idx + 3]
    hidden = wa.shape[0]
    assert output_size + 1 <= pad
    w_slab = w_slab.at[num_layers, :hidden, :output_size].set(wa)
    w_slab = w_slab.at[num_layers, :hidden, output_size : output_size + 1].set(wc)
    b_slab = b_slab.at[num_layers, 0, :output_size].set(ba.reshape(-1))
    b_slab = b_slab.at[num_layers, 0, output_size].set(bc[0, 0])
    return w_slab, b_slab


@functools.partial(jax.jit, static_argnames=("num_layers", "activation", "output_size"))
def model_forward(x, w_slab, b_slab, *, num_layers, activation, output_size):
    B, in_feat = x.shape
    pad = w_slab.shape[-1]

    # Zero-pad the input to a lane-dense (B, pad) slab (XLA pad, ~free).
    x_pad = jnp.zeros((B, pad), jnp.float32).at[:, :in_feat].set(x.astype(jnp.float32))

    out = pl.pallas_call(
        _make_kernel(num_layers, activation, output_size),
        out_shape=jax.ShapeDtypeStruct((B, pad), jnp.float32),
        in_specs=[
            pl.BlockSpec(memory_space=pltpu.MemorySpace.VMEM),
            pl.BlockSpec(memory_space=pltpu.MemorySpace.VMEM),
            pl.BlockSpec(memory_space=pltpu.MemorySpace.VMEM),
        ],
        out_specs=pl.BlockSpec(memory_space=pltpu.MemorySpace.VMEM),
    )(x_pad, w_slab, b_slab)

    actor = out[:, :output_size]
    critic = out[:, output_size : output_size + 1]
    return actor, critic


def reference_forward(x, params, num_layers, activation):
    """Pure-JAX reference mirroring the PyTorch forward."""
    act = {"relu": lambda v: jnp.maximum(v, 0.0), "tanh": jnp.tanh}[activation]
    h = x
    idx = 0
    for _ in range(num_layers):
        w, b = params[idx], params[idx + 1]
        idx += 2
        h = act(h @ w + b)
    wa, ba, wc, bc = params[idx], params[idx + 1], params[idx + 2], params[idx + 3]
    return jax.nn.softmax(h @ wa + ba, axis=-1), h @ wc + bc


if __name__ == "__main__":
    # Config matching Model(input_size=16, output_size=4, hidden_size=32,
    #                       hidden_activation='relu', num_layers=2, dropout_rate=0.0)
    input_size, output_size, hidden_size = 16, 4, 32
    num_layers, activation = 2, "relu"
    batch = 8

    key = jax.random.PRNGKey(0)
    k_param, k_x = jax.random.split(key)
    params = init_params(k_param, input_size, output_size, hidden_size, num_layers)
    w_slab, b_slab = pack_params(params, num_layers, output_size)
    x = jax.random.normal(k_x, (batch, input_size), jnp.float32)

    actor, critic = model_forward(
        x, w_slab, b_slab,
        num_layers=num_layers, activation=activation, output_size=output_size,
    )
    jax.block_until_ready((actor, critic))

    ref_actor, ref_critic = reference_forward(x, params, num_layers, activation)
    assert actor.shape == (batch, output_size)
    assert critic.shape == (batch, 1)
    assert jnp.allclose(actor, ref_actor, atol=1e-5, rtol=1e-5)
    assert jnp.allclose(critic, ref_critic, atol=1e-5, rtol=1e-5)
    # softmax rows sum to 1
    assert jnp.allclose(jnp.sum(actor, axis=-1), 1.0, atol=1e-5)

    print("KERNEL_OK")
</pallas_src>

<mosaic_0001>
module attributes {stable_mosaic.version = 11 : i64} {
  func.func @kernel(%arg0: memref<8x128xf32, #tpu.memory_space<vmem>>, %arg1: memref<3x128x128xf32, #tpu.memory_space<vmem>>, %arg2: memref<3x1x128xf32, #tpu.memory_space<vmem>>, %arg3: memref<8x128xf32, #tpu.memory_space<vmem>>) attributes {dimension_semantics = [], scalar_prefetch = 0 : i64, scratch_operands = 0 : i64, tpu.core_type = #tpu.core_type<tc>} {
    %c0 = arith.constant 0 : index
    %c0_0 = arith.constant 0 : index
    %0 = vector.load %arg0[%c0, %c0_0] : memref<8x128xf32, #tpu.memory_space<vmem>>, vector<8x128xf32>
    %c0_1 = arith.constant 0 : index
    %c0_2 = arith.constant 0 : index
    %c0_3 = arith.constant 0 : index
    %1 = vector.load %arg1[%c0_1, %c0_2, %c0_3] : memref<3x128x128xf32, #tpu.memory_space<vmem>>, vector<1x128x128xf32>
    %2 = vector.shape_cast %1 : vector<1x128x128xf32> to vector<128x128xf32>
    %cst = arith.constant dense<0.000000e+00> : vector<8x128xf32>
    %3 = tpu.matmul %0, %2, %cst {dimension_numbers = #tpu.dot_dimension_numbers<[1], [0], [0], [1], [0, 0, 1, 1], [], []>} : vector<8x128xf32>, vector<128x128xf32>, vector<8x128xf32> -> vector<8x128xf32>
    %c0_4 = arith.constant 0 : index
    %c0_5 = arith.constant 0 : index
    %c0_6 = arith.constant 0 : index
    %4 = vector.load %arg2[%c0_4, %c0_5, %c0_6] : memref<3x1x128xf32, #tpu.memory_space<vmem>>, vector<1x1x128xf32>
    %5 = vector.shape_cast %4 : vector<1x1x128xf32> to vector<1x128xf32>
    %6 = vector.broadcast %5 : vector<1x128xf32> to vector<8x128xf32>
    %7 = arith.addf %3, %6 : vector<8x128xf32>
    %cst_7 = arith.constant 0.000000e+00 : f32
    %8 = vector.broadcast %cst_7 : f32 to vector<8x128xf32>
    %9 = arith.maximumf %7, %8 : vector<8x128xf32>
    %c1 = arith.constant 1 : index
    %c0_8 = arith.constant 0 : index
    %c0_9 = arith.constant 0 : index
    %10 = vector.load %arg1[%c1, %c0_8, %c0_9] : memref<3x128x128xf32, #tpu.memory_space<vmem>>, vector<1x128x128xf32>
    %11 = vector.shape_cast %10 : vector<1x128x128xf32> to vector<128x128xf32>
    %cst_10 = arith.constant dense<0.000000e+00> : vector<8x128xf32>
    %12 = tpu.matmul %9, %11, %cst_10 {dimension_numbers = #tpu.dot_dimension_numbers<[1], [0], [0], [1], [0, 0, 1, 1], [], []>} : vector<8x128xf32>, vector<128x128xf32>, vector<8x128xf32> -> vector<8x128xf32>
    %c1_11 = arith.constant 1 : index
    %c0_12 = arith.constant 0 : index
    %c0_13 = arith.constant 0 : index
    %13 = vector.load %arg2[%c1_11, %c0_12, %c0_13] : memref<3x1x128xf32, #tpu.memory_space<vmem>>, vector<1x1x128xf32>
    %14 = vector.shape_cast %13 : vector<1x1x128xf32> to vector<1x128xf32>
    %15 = vector.broadcast %14 : vector<1x128xf32> to vector<8x128xf32>
    %16 = arith.addf %12, %15 : vector<8x128xf32>
    %cst_14 = arith.constant 0.000000e+00 : f32
    %17 = vector.broadcast %cst_14 : f32 to vector<8x128xf32>
    %18 = arith.maximumf %16, %17 : vector<8x128xf32>
    %c2 = arith.constant 2 : index
    %c0_15 = arith.constant 0 : index
    %c0_16 = arith.constant 0 : index
    %19 = vector.load %arg1[%c2, %c0_15, %c0_16] : memref<3x128x128xf32, #tpu.memory_space<vmem>>, vector<1x128x128xf32>
    %20 = vector.shape_cast %19 : vector<1x128x128xf32> to vector<128x128xf32>
    %cst_17 = arith.constant dense<0.000000e+00> : vector<8x128xf32>
    %21 = tpu.matmul %18, %20, %cst_17 {dimension_numbers = #tpu.dot_dimension_numbers<[1], [0], [0], [1], [0, 0, 1, 1], [], []>} : vector<8x128xf32>, vector<128x128xf32>, vector<8x128xf32> -> vector<8x128xf32>
    %c2_18 = arith.constant 2 : index
    %c0_19 = arith.constant 0 : index
    %c0_20 = arith.constant 0 : index
    %22 = vector.load %arg2[%c2_18, %c0_19, %c0_20] : memref<3x1x128xf32, #tpu.memory_space<vmem>>, vector<1x1x128xf32>
    %23 = vector.shape_cast %22 : vector<1x1x128xf32> to vector<1x128xf32>
    %24 = vector.broadcast %23 : vector<1x128xf32> to vector<8x128xf32>
    %25 = arith.addf %21, %24 : vector<8x128xf32>
    %26 = tpu.iota {dimensions = array<i32: 1>} : vector<8x128xi32>
    %c4_i32 = arith.constant 4 : i32
    %27 = vector.broadcast %c4_i32 : i32 to vector<8x128xi32>
    %28 = arith.cmpi slt, %26, %27 : vector<8x128xi32>
    %cst_21 = arith.constant -1.000000e+30 : f32
    %29 = vector.broadcast %cst_21 : f32 to vector<8x128xf32>
    %30 = arith.select %28, %25, %29 : vector<8x128xi1>, vector<8x128xf32>
    %cst_22 = arith.constant dense<0xFF800000> : vector<8xf32>
    %31 = vector.multi_reduction <maximumf>, %30, %cst_22 [1] : vector<8x128xf32> to vector<8xf32>
    %32 = vector.shape_cast %31 : vector<8xf32> to vector<8x1xf32>
    %33 = vector.broadcast %32 : vector<8x1xf32> to vector<8x128xf32>
    %34 = arith.subf %30, %33 : vector<8x128xf32>
    %35 = math.exp %34 : vector<8x128xf32>
    %cst_23 = arith.constant dense<0.000000e+00> : vector<8xf32>
    %36 = vector.multi_reduction <add>, %35, %cst_23 [1] : vector<8x128xf32> to vector<8xf32>
    %37 = vector.shape_cast %36 : vector<8xf32> to vector<8x1xf32>
    %38 = tpu.reciprocal %37 : vector<8x1xf32> -> vector<8x1xf32>
    %39 = vector.broadcast %38 : vector<8x1xf32> to vector<8x128xf32>
    %40 = arith.mulf %35, %39 : vector<8x128xf32>
    %41 = arith.select %28, %40, %25 : vector<8x128xi1>, vector<8x128xf32>
    %c0_24 = arith.constant 0 : index
    %c0_25 = arith.constant 0 : index
    %42 = vector.load %arg3[%c0_24, %c0_25] : memref<8x128xf32, #tpu.memory_space<vmem>>, vector<8x128xf32>
    tpu.vector_store %arg3[%c0_24, %c0_25], %41 {strides = array<i32>} : memref<8x128xf32, #tpu.memory_space<vmem>>, vector<8x128xf32>,
    return
  }
}

</mosaic_0001>

<bundles_post_ra>
// kernel: model_forward.1
= control target key start
LH: loop header
LB: loop body
LE: loop exit
PB: predicated region body
PF: predicated region fallthrough
CT: control target
= control target key end

     0   :  { %8 = vsyncpa [#allocation3], 0  ;;  %s228_s15 = smov [#allocation2]   ;;  %s229_s17 = smov 128   ;;  %s271_s0 = inlined_call_operand.vmem [shape: f32[8,128], index: 0, kind: input, shape index: {}]   ;;  %s272_s1 = inlined_call_operand.hbm [shape: f32[3,128,128], index: 1, kind: input, shape index: {}]   ;;  %s273_s2 = inlined_call_operand.vmem [shape: f32[3,1,128], index: 2, kind: input, shape index: {}]   ;;  %s274_s3 = inlined_call_operand.vmem [shape: f32[8,128], index: 3, kind: output, shape index: {}]  }
   0x1   :  { %s15_s14 = sshll.u32 %s272_s1, 4  ;;  %s17_s16 = sshll.u32 %s228_s15, 4  ;;  %s16_s14 = int_to_ptr.hbm [resolvable:$true] %s15_s14  ;;  %s18_s16 = int_to_ptr.vmem [resolvable:$true] %s17_s16 }
   0x2   :  { %s230_s18 = smov 8  }
   0x3   :  { %23 = dma.hbm_to_vmem [thread:$0]  %s16_s14, 6144, %s18_s16, [#allocation3], %s229_s17, %s229_s17, %s230_s18  }
   0x4   :  { %226 = dma.done.wait [#allocation3], 6144  }
   0x5   :  { %227 = vsyncadd [#allocation3], 4294961152  ;;  %v46_v0 = vld [vmem:[#allocation2 + $0x78] sm:$0xff]  ;;  %v45_v1 = vld [vmem:[#allocation2 + $0x70] sm:$0xff]  ;;  %v157_v57 = vlaneseq }
   0x6   :  { %51 = vmatpush.msra.mxu0 %v46_v0  ;;  %v44_v2 = vld [vmem:[#allocation2 + $0x68] sm:$0xff]  ;;  %v43_v3 = vld [vmem:[#allocation2 + $0x60] sm:$0xff]  ;;  %v88_v4 = vld [vmem:[#allocation2 + $0xf8] sm:$0xff] }
   0x7   :  { %v42_v5 = vld [vmem:[#allocation2 + $0x58] sm:$0xff]  ;;  %94 = vmatpush.msra.mxu1 %v88_v4  ;;  %v87_v6 = vld [vmem:[#allocation2 + $0xf0] sm:$0xff]  ;;  %v86_v7 = vld [vmem:[#allocation2 + $0xe8] sm:$0xff]  ;;  %v158_v58 = vand.u32 127, %v157_v57 }
   0x8   :  { %52 = vmatpush.msra.mxu0 %v45_v1  ;;  %v41_v8 = vld [vmem:[#allocation2 + $0x50] sm:$0xff]  ;;  %v85_v9 = vld [vmem:[#allocation2 + $0xe0] sm:$0xff]  ;;  %v40_v10 = vld [vmem:[#allocation2 + $0x48] sm:$0xff] }
   0x9   :  { %95 = vmatpush.msra.mxu1 %v87_v6  ;;  %v84_v11 = vld [vmem:[#allocation2 + $0xd8] sm:$0xff]  ;;  %v39_v12 = vld [vmem:[#allocation2 + $0x40] sm:$0xff]  ;;  %v83_v13 = vld [vmem:[#allocation2 + $0xd0] sm:$0xff]  ;;  %vm159_vm0 = vcmp.lt.s32.totalorder %v158_v58, 4 }
   0xa   :  { %53 = vmatpush.msra.mxu0 %v44_v2  ;;  %v38_v14 = vld [vmem:[#allocation2 + $0x38] sm:$0xff]  ;;  %v82_v15 = vld [vmem:[#allocation2 + $0xc8] sm:$0xff]  ;;  %v37_v16 = vld [vmem:[#allocation2 + $0x30] sm:$0xff] }
   0xb   :  { %96 = vmatpush.msra.mxu1 %v86_v7  ;;  %v81_v17 = vld [vmem:[#allocation2 + $0xc0] sm:$0xff]  ;;  %v36_v18 = vld [vmem:[#allocation2 + $0x28] sm:$0xff]  ;;  %v80_v19 = vld [vmem:[#allocation2 + $0xb8] sm:$0xff] }
   0xc   :  { %54 = vmatpush.msra.mxu0 %v43_v3  ;;  %v35_v20 = vld [vmem:[#allocation2 + $0x20] sm:$0xff]  ;;  %v79_v21 = vld [vmem:[#allocation2 + $0xb0] sm:$0xff]  ;;  %v34_v22 = vld [vmem:[#allocation2 + $0x18] sm:$0xff] }
   0xd   :  { %97 = vmatpush.msra.mxu1 %v85_v9  ;;  %v78_v23 = vld [vmem:[#allocation2 + $0xa8] sm:$0xff]  ;;  %v33_v24 = vld [vmem:[#allocation2 + $0x10] sm:$0xff]  ;;  %v77_v25 = vld [vmem:[#allocation2 + $0xa0] sm:$0xff] }
   0xe   :  { %55 = vmatpush.msra.mxu0 %v42_v5  ;;  %v32_v26 = vld [vmem:[#allocation2 + $0x8] sm:$0xff]  ;;  %v76_v27 = vld [vmem:[#allocation2 + $0x98] sm:$0xff]  ;;  %v31_v28 = vld [vmem:[#allocation2] sm:$0xff] }
   0xf   :  { %98 = vmatpush.msra.mxu1 %v84_v11  ;;  %v30_v29 = vld [vmem:[%s271_s0] sm:$0xff]  ;;  %v75_v30 = vld [vmem:[#allocation2 + $0x90] sm:$0xff]  ;;  %v74_v31 = vld [vmem:[#allocation2 + $0x88] sm:$0xff] }
  0x10   :  { %56 = vmatpush.msra.mxu0 %v41_v8  ;;  %v73_v32 = vld [vmem:[#allocation2 + $0x80] sm:$0xff]  ;;  %v131_v33 = vld [vmem:[#allocation2 + $0x178] sm:$0xff]  ;;  %v130_v34 = vld [vmem:[#allocation2 + $0x170] sm:$0xff] }
  0x11   :  { %99 = vmatpush.msra.mxu1 %v83_v13  ;;  %137 = vmatpush.msra.mxu2 %v131_v33  ;;  %v129_v35 = vld [vmem:[#allocation2 + $0x168] sm:$0xff]  ;;  %v128_v36 = vld [vmem:[#allocation2 + $0x160] sm:$0xff]  ;;  %v127_v37 = vld [vmem:[#allocation2 + $0x158] sm:$0xff] }
  0x12   :  { %57 = vmatpush.msra.mxu0 %v40_v10  ;;  %v126_v38 = vld [vmem:[#allocation2 + $0x150] sm:$0xff]  ;;  %v125_v39 = vld [vmem:[#allocation2 + $0x148] sm:$0xff]  ;;  %v124_v40 = vld [vmem:[#allocation2 + $0x140] sm:$0xff] }
  0x13   :  { %100 = vmatpush.msra.mxu1 %v82_v15  ;;  %138 = vmatpush.msra.mxu2 %v130_v34  ;;  %v123_v41 = vld [vmem:[#allocation2 + $0x138] sm:$0xff]  ;;  %v122_v42 = vld [vmem:[#allocation2 + $0x130] sm:$0xff]  ;;  %v121_v43 = vld [vmem:[#allocation2 + $0x128] sm:$0xff] }
  0x14   :  { %58 = vmatpush.msra.mxu0 %v39_v12  ;;  %v120_v44 = vld [vmem:[#allocation2 + $0x120] sm:$0xff]  ;;  %v119_v45 = vld [vmem:[#allocation2 + $0x118] sm:$0xff]  ;;  %v118_v50 = vld [vmem:[#allocation2 + $0x110] sm:$0xff] }
  0x15   :  { %101 = vmatpush.msra.mxu1 %v81_v17  ;;  %139 = vmatpush.msra.mxu2 %v129_v35  ;;  %v195_v46 = vld [vmem:[%s273_s2] ss:$0 sm:$0xff]  ;;  %v117_v51 = vld [vmem:[#allocation2 + $0x108] sm:$0xff]  ;;  %v196_v53 = vld [vmem:[%s273_s2 + $0x1] ss:$0 sm:$0xff] }
  0x16   :  { %59 = vmatpush.msra.mxu0 %v38_v14  ;;  %v116_v52 = vld [vmem:[#allocation2 + $0x100] sm:$0xff] }
  0x17   :  { %102 = vmatpush.msra.mxu1 %v80_v19  ;;  %140 = vmatpush.msra.mxu2 %v128_v36  ;;  %v197_v59 = vld [vmem:[%s273_s2 + $0x2] ss:$0 sm:$0xff] }
  0x18   :  { %60 = vmatpush.msra.mxu0 %v37_v16 }
  0x19   :  { %103 = vmatpush.msra.mxu1 %v79_v21  ;;  %141 = vmatpush.msra.mxu2 %v127_v37 }
  0x1a   :  { %61 = vmatpush.msra.mxu0 %v36_v18 }
  0x1b   :  { %104 = vmatpush.msra.mxu1 %v78_v23  ;;  %142 = vmatpush.msra.mxu2 %v126_v38 }
  0x1c   :  { %62 = vmatpush.msra.mxu0 %v35_v20 }
  0x1d   :  { %105 = vmatpush.msra.mxu1 %v77_v25  ;;  %143 = vmatpush.msra.mxu2 %v125_v39 }
  0x1e   :  { %63 = vmatpush.msra.mxu0 %v34_v22 }
  0x1f   :  { %106 = vmatpush.msra.mxu1 %v76_v27  ;;  %144 = vmatpush.msra.mxu2 %v124_v40 }
  0x20   :  { %64 = vmatpush.msra.mxu0 %v33_v24 }
  0x21   :  { %107 = vmatpush.msra.mxu1 %v75_v30  ;;  %145 = vmatpush.msra.mxu2 %v123_v41 }
  0x22   :  { %65 = vmatpush.msra.mxu0 %v32_v26 }
  0x23   :  { %108 = vmatpush.msra.mxu1 %v74_v31  ;;  %146 = vmatpush.msra.mxu2 %v122_v42 }
  0x24   :  { %66 = vmatpush.msra.mxu0 %v31_v28 }
  0x25   :  { %67 = vmatmul.f32.vlgmr.msra.gmra.mxu0 %v30_v29  ;;  %109 = vmatpush.msra.mxu1 %v73_v32 }
  0x26   :  { %147 = vmatpush.msra.mxu2 %v121_v43 }
  0x28   :  { %148 = vmatpush.msra.mxu2 %v120_v44 }
  0x2a   :  { %149 = vmatpush.msra.mxu2 %v119_v45 }
  0x2c   :  { %150 = vmatpush.msra.mxu2 %v118_v50 }
  0x2e   :  { %151 = vmatpush.msra.mxu2 %v117_v51 }
  0x30   :  { %152 = vmatpush.msra.mxu2 %v116_v52 }
  0xa2   :  { %v68_v47 = vpop.f32.mrf.mxu0 }
  0xa3   :  { %v69_v48 = vadd.f32 %v195_v46, %v68_v47 }
  0xa5   :  { %v71_v49 = vmax.f32 %v69_v48, 0.0 }
  0xa7   :  { %110 = vmatmul.f32.vlgmr.msra.gmra.mxu1 %v71_v49 }
 0x124   :  { %v111_v54 = vpop.f32.mrf.mxu1 }
 0x125   :  { %v112_v55 = vadd.f32 %v196_v53, %v111_v54 }
 0x127   :  { %v114_v56 = vmax.f32 %v112_v55, 0.0 }
 0x129   :  { %153 = vmatmul.f32.vlgmr.msra.gmra.mxu2 %v114_v56 }
 0x1ac   :  { %v154_v60 = vpop.f32.mrf.mxu2 }
 0x1ad   :  { %v155_v61 = vadd.f32 %v197_v59, %v154_v60 }
 0x1af   :  { %v160_v62 = vsel %vm159_vm0, %v155_v61, -1e+30 }
 0x1b0   :  { %161 = vmax.xlane.f32.xlu0 %v160_v62 }
 0x223   :  { %v162_v63 = vpop.xlane.xlu0 %161 }
 0x224   :  { %v163_v0 = vsub.f32 %v160_v62, %v162_v63 }
 0x226   :  { %v164_v1 = vmul.f32 1.442695, %v163_v0 }
 0x228   :  { %198 = vpow2.f32 %v164_v1 }
 0x22e   :  { %v199_v2 = vpop.eup %198 }
 0x22f   :  { %166 = vadd.xlane.f32.xlu0 %v199_v2 }
 0x2a2   :  { %v167_v3 = vpop.xlane.xlu0 %166 }
 0x2a3   :  { %200 = vrcp.f32 %v167_v3  ;;  %v179_v7 = vand.u32 2147483648, %v167_v3  ;;  %v177_v9 = vand.u32 2147483647, %v167_v3  ;;  %vm173_vm2 = vweird.f32 %v167_v3 }
 0x2a5   :  { %v180_v11 = vor.u32 1.1754944e-38, %v179_v7  ;;  %vm178_vm4 = vcmp.eq.f32.partialorder %v177_v9, 8.507059e+37 }
 0x2a9   :  { %v201_v4 = vpop.eup %200 }
 0x2aa   :  { %v169_v5 = vmul.f32 %v201_v4, %v167_v3  ;;  %vm174_vm1 = vweird.f32 %v201_v4 }
 0x2ab   :  { %vm175_vm3 = vmor %vm173_vm2, %vm174_vm1 }
 0x2ac   :  { %v170_v6 = vsub.f32 1.0, %v169_v5 }
 0x2ae   :  { %v171_v8 = vmul.f32 %v201_v4, %v170_v6 }
 0x2b0   :  { %v172_v10 = vadd.f32 %v201_v4, %v171_v8 }
 0x2b2   :  { %v176_v12 = vsel %vm175_vm3, %v201_v4, %v172_v10 }
 0x2b3   :  { %v181_v13 = vsel %vm178_vm4, %v180_v11, %v176_v12 }
 0x2b4   :  { %v182_v14 = vmul.f32 %v199_v2, %v181_v13 }
 0x2b6   :  { %v183_v15 = vsel %vm159_vm0, %v182_v14, %v155_v61 }
 0x2b7   :  { %184 = vst [vmem:[%s274_s3] sm:$0xff] %v183_v15 }
 0x2b8   :  { %189 = vsyncpa [#allocation3], 1 }

</bundles_post_ra>
